<compile_context>
chip_gen: v6e
topology: v6e:2x2x1
jax: 0.10.0
libtpu: 0.0.40
codegen_flags: <defaults>
</compile_context>

<pallas_src>
import jax
import jax.numpy as jnp
from jax.experimental import pallas as pl
from jax.experimental.pallas import tpu as pltpu

_MAX_DMA_CHUNKS = 4            # concurrent DMA engines to use for big copies
_MIN_CHUNK_BYTES = 16 * 1024   # don't bother splitting copies smaller than this


def _make_hbm_copy_kernel(chunk_bounds):
    """Build a kernel that copies `x` to `o` via len(chunk_bounds) concurrent
    HBM->HBM DMAs.  `chunk_bounds` is a static tuple of (start_row, n_rows)
    Python ints along axis 0 of the (un-reshaped) array."""
    n_chunks = len(chunk_bounds)

    def kernel(x_hbm, o_hbm, sems):
        copies = []
        for c, (start, size) in enumerate(chunk_bounds):
            cp = pltpu.make_async_copy(
                x_hbm.at[pl.ds(start, size)],
                o_hbm.at[pl.ds(start, size)],
                sems.at[c],
            )
            cp.start()                 # issue all DMAs back-to-back...
            copies.append(cp)
        for cp in copies:              # ...then wait, so they run concurrently
            cp.wait()

    return kernel, pltpu.SemaphoreType.DMA((n_chunks,))


def nonorm_forward(x):
    """NoNorm.forward(x) == x, as a direct HBM->HBM DMA copy.

    Accepts any shape/dtype; returns an array with identical shape, dtype and
    values.  No padding, no reshapes, no slices — 1x read + 1x write of HBM.
    """
    if x.ndim == 0 or x.size == 0:
        return x  # nothing to DMA; identity

    total_bytes = x.size * x.dtype.itemsize
    dim0 = x.shape[0]
    n_chunks = int(max(1, min(dim0, _MAX_DMA_CHUNKS,
                              total_bytes // _MIN_CHUNK_BYTES)))

    # Static, roughly equal leading-axis slabs (each DMA has static bounds).
    base, rem = divmod(dim0, n_chunks)
    bounds, start = [], 0
    for c in range(n_chunks):
        size = base + (1 if c < rem else 0)
        bounds.append((start, size))
        start += size

    kernel, sem_shape = _make_hbm_copy_kernel(tuple(bounds))

    return pl.pallas_call(
        kernel,
        out_shape=jax.ShapeDtypeStruct(x.shape, x.dtype),
        in_specs=[pl.BlockSpec(memory_space=pl.ANY)],
        out_specs=pl.BlockSpec(memory_space=pl.ANY),
        scratch_shapes=[sem_shape],
    )(x)


class NoNorm:
    """Mirror of the PyTorch module: a fake norm layer that passes x through.

    run_kernel=False is the production setting (pure no-op, zero HBM traffic —
    review item 1).  run_kernel=True routes through the Pallas HBM->HBM copy
    kernel so the identity is a real device-side boundary.
    """

    def __init__(self, fake=True, run_kernel=True):
        self.fake = fake
        self.run_kernel = run_kernel

    def forward(self, x):
        if not self.run_kernel:
            return x
        return nonorm_forward(x)

    def __call__(self, x):
        return self.forward(x)


if __name__ == "__main__":
    key = jax.random.PRNGKey(0)

    # MeshCNN feature-map layout that NoNorm sees: (batch, channels, n_edges, 1).
    B, C, E = 2, 4, 16
    x = jax.random.normal(key, (B, C, E, 1), jnp.float32)

    norm = NoNorm(fake=True)
    y = jax.block_until_ready(jax.jit(norm)(x))
    assert y.shape == x.shape and y.dtype == x.dtype
    assert bool(jnp.array_equal(y, x))

    # Larger case with an odd edge count: exercises the multi-DMA-chunk path
    # (3 concurrent slab DMAs), still no padding / reshapes anywhere.
    x_big = jax.random.normal(jax.random.PRNGKey(1), (3, 8, 1001, 1),
                              jnp.float32)
    y_big = jax.block_until_ready(jax.jit(nonorm_forward)(x_big))
    assert bool(jnp.array_equal(y_big, x_big))

    # Non-f32 dtype: the DMA path has no (8,128)/packing tile constraints.
    x_bf = jax.random.normal(jax.random.PRNGKey(2), (2, 4, 16, 1),
                             jnp.bfloat16)
    y_bf = jax.block_until_ready(jax.jit(nonorm_forward)(x_bf))
    assert bool(jnp.array_equal(y_bf, x_bf))

    # Production no-op path (review item 1): literally returns x.
    norm_noop = NoNorm(fake=True, run_kernel=False)
    y0 = norm_noop(x)
    assert y0 is x

    print("KERNEL_OK")
</pallas_src>

<mosaic_0001>
module attributes {stable_mosaic.version = 11 : i64} {
  func.func @kernel(%arg0: memref<2x4x16x1xf32, #tpu.memory_space<any>>, %arg1: memref<2x4x16x1xf32, #tpu.memory_space<any>>, %arg2: memref<1x!tpu.dma_semaphore, #tpu.memory_space<semaphore_mem>>) attributes {dimension_semantics = [], scalar_prefetch = 0 : i64, scratch_operands = 1 : i64, tpu.core_type = #tpu.core_type<tc>} {
    %c0_i32 = arith.constant 0 : i32
    %c0_i32_0 = arith.constant 0 : i32
    %c0_i32_1 = arith.constant 0 : i32
    %c0_i32_2 = arith.constant 0 : i32
    %c0_i32_3 = arith.constant 0 : i32
    %0 = tpu.memref_slice %arg0[%c0_i32_0, %c0_i32_1, %c0_i32_2, %c0_i32_3] : memref<2x4x16x1xf32, #tpu.memory_space<any>> -> memref<2x4x16x1xf32, #tpu.memory_space<any>>
    %c0_i32_4 = arith.constant 0 : i32
    %c0_i32_5 = arith.constant 0 : i32
    %c0_i32_6 = arith.constant 0 : i32
    %c0_i32_7 = arith.constant 0 : i32
    %1 = tpu.memref_slice %arg1[%c0_i32_4, %c0_i32_5, %c0_i32_6, %c0_i32_7] : memref<2x4x16x1xf32, #tpu.memory_space<any>> -> memref<2x4x16x1xf32, #tpu.memory_space<any>>
    %2 = tpu.memref_slice %arg2[%c0_i32] : memref<1x!tpu.dma_semaphore, #tpu.memory_space<semaphore_mem>> -> memref<1x!tpu.dma_semaphore, #tpu.memory_space<semaphore_mem>>
    %3 = tpu.memref_squeeze %2 : memref<1x!tpu.dma_semaphore, #tpu.memory_space<semaphore_mem>> -> memref<!tpu.dma_semaphore, #tpu.memory_space<semaphore_mem>>
    tpu.enqueue_dma source(%0 : memref<2x4x16x1xf32, #tpu.memory_space<any>>) target(%1 : memref<2x4x16x1xf32, #tpu.memory_space<any>>) target_semaphore(%3 : memref<!tpu.dma_semaphore, #tpu.memory_space<semaphore_mem>>)
    %c0_i32_8 = arith.constant 0 : i32
    %c0_i32_9 = arith.constant 0 : i32
    %c0_i32_10 = arith.constant 0 : i32
    %c0_i32_11 = arith.constant 0 : i32
    %c0_i32_12 = arith.constant 0 : i32
    %4 = tpu.memref_slice %arg0[%c0_i32_9, %c0_i32_10, %c0_i32_11, %c0_i32_12] : memref<2x4x16x1xf32, #tpu.memory_space<any>> -> memref<2x4x16x1xf32, #tpu.memory_space<any>>
    %c0_i32_13 = arith.constant 0 : i32
    %c0_i32_14 = arith.constant 0 : i32
    %c0_i32_15 = arith.constant 0 : i32
    %c0_i32_16 = arith.constant 0 : i32
    %5 = tpu.memref_slice %arg1[%c0_i32_13, %c0_i32_14, %c0_i32_15, %c0_i32_16] : memref<2x4x16x1xf32, #tpu.memory_space<any>> -> memref<2x4x16x1xf32, #tpu.memory_space<any>>
    %6 = tpu.memref_slice %arg2[%c0_i32_8] : memref<1x!tpu.dma_semaphore, #tpu.memory_space<semaphore_mem>> -> memref<1x!tpu.dma_semaphore, #tpu.memory_space<semaphore_mem>>
    %7 = tpu.memref_squeeze %6 : memref<1x!tpu.dma_semaphore, #tpu.memory_space<semaphore_mem>> -> memref<!tpu.dma_semaphore, #tpu.memory_space<semaphore_mem>>
    tpu.wait_dma2 semaphore(%7 : memref<!tpu.dma_semaphore, #tpu.memory_space<semaphore_mem>>) src(%4 : memref<2x4x16x1xf32, #tpu.memory_space<any>>) dst(%5 : memref<2x4x16x1xf32, #tpu.memory_space<any>>)
    return
  }
}

</mosaic_0001>

<bundles_post_ra>
// kernel: _unnamed_function_.1
= control target key start
LH: loop header
LB: loop body
LE: loop exit
PB: predicated region body
PF: predicated region fallthrough
CT: control target
= control target key end

     0   :  { %s207_s0 = inlined_call_operand.vmem [shape: f32[2,4,16,1], index: 0, kind: input, shape index: {}]   ;;  %s208_s1 = inlined_call_operand.vmem [shape: f32[2,4,16,1], index: 1, kind: output, shape index: {}]  }
   0x1   :  { %v39_v0 = vld [vmem:[%s207_s0] sm:$0xff]  ;;  %v41_v1 = vld [vmem:[%s207_s0 + $0x8] sm:$0xff]  ;;  %v43_v2 = vld [vmem:[%s207_s0 + $0x10] sm:$0xff] }
   0x2   :  { %40 = vst [vmem:[%s208_s1] sm:$0xff] %v39_v0  ;;  %42 = vst [vmem:[%s208_s1 + $0x8] sm:$0xff] %v41_v1  ;;  %v45_v3 = vld [vmem:[%s207_s0 + $0x18] sm:$0xff]  ;;  %v47_v4 = vld [vmem:[%s207_s0 + $0x20] sm:$0xff] }
   0x3   :  { %44 = vst [vmem:[%s208_s1 + $0x10] sm:$0xff] %v43_v2  ;;  %v49_v5 = vld [vmem:[%s207_s0 + $0x28] sm:$0xff]  ;;  %46 = vst [vmem:[%s208_s1 + $0x18] sm:$0xff] %v45_v3  ;;  %v51_v6 = vld [vmem:[%s207_s0 + $0x30] sm:$0xff] }
   0x4   :  { %48 = vst [vmem:[%s208_s1 + $0x20] sm:$0xff] %v47_v4  ;;  %50 = vst [vmem:[%s208_s1 + $0x28] sm:$0xff] %v49_v5  ;;  %v53_v7 = vld [vmem:[%s207_s0 + $0x38] sm:$0xff]  ;;  %v55_v8 = vld [vmem:[%s207_s0 + $0x40] sm:$0xff] }
   0x5   :  { %52 = vst [vmem:[%s208_s1 + $0x30] sm:$0xff] %v51_v6  ;;  %54 = vst [vmem:[%s208_s1 + $0x38] sm:$0xff] %v53_v7  ;;  %v57_v9 = vld [vmem:[%s207_s0 + $0x48] sm:$0xff]  ;;  %v59_v10 = vld [vmem:[%s207_s0 + $0x50] sm:$0xff] }
   0x6   :  { %56 = vst [vmem:[%s208_s1 + $0x40] sm:$0xff] %v55_v8  ;;  %v61_v11 = vld [vmem:[%s207_s0 + $0x58] sm:$0xff]  ;;  %58 = vst [vmem:[%s208_s1 + $0x48] sm:$0xff] %v57_v9  ;;  %v63_v12 = vld [vmem:[%s207_s0 + $0x60] sm:$0xff] }
   0x7   :  { %60 = vst [vmem:[%s208_s1 + $0x50] sm:$0xff] %v59_v10  ;;  %62 = vst [vmem:[%s208_s1 + $0x58] sm:$0xff] %v61_v11  ;;  %v65_v13 = vld [vmem:[%s207_s0 + $0x68] sm:$0xff]  ;;  %v67_v14 = vld [vmem:[%s207_s0 + $0x70] sm:$0xff] }
   0x8   :  { %64 = vst [vmem:[%s208_s1 + $0x60] sm:$0xff] %v63_v12  ;;  %66 = vst [vmem:[%s208_s1 + $0x68] sm:$0xff] %v65_v13  ;;  %v69_v15 = vld [vmem:[%s207_s0 + $0x78] sm:$0xff] }
   0x9   :  { %68 = vst [vmem:[%s208_s1 + $0x70] sm:$0xff] %v67_v14  ;;  %70 = vst [vmem:[%s208_s1 + $0x78] sm:$0xff] %v69_v15 }
   0xa   :  { %78 = vsyncadd [#allocation2], 2048 }
   0xb   :  { %99 = dma.done.wait [#allocation2], 2048 }
   0xc   :  { %100 = vsyncadd [#allocation2], 4294965248 }
   0xd   :  { %84 = vsyncmov [#allocation2] }
  0x10   :  { %s85_s12 = vpop.sfrf %84 }
  0x11   :  { %p98_p0 = scmp.ne.s32.totalorder %s85_s12, 0 }
  0x13   :  { %89 = shalt.err (%p98_p0)  }

</bundles_post_ra>
